<compile_context>
chip_gen: v7x
topology: tpu7x:2x2x1
jax: 0.10.0
libtpu: 0.0.40
codegen_flags: <defaults>
</compile_context>

<pallas_src>
import functools

import jax
import jax.numpy as jnp
import numpy as np
from jax.experimental import pallas as pl
from jax.experimental.pallas import tpu as pltpu


def _make_gather_kernel(G):
    """Kernel: gather G rows of x2:[N, BD] (HBM) into one (G, BD) output block."""

    def kernel(proj_ref, x_hbm, o_ref, buf, sems):
        base = pl.program_id(0) * G
        # Issue all G row-DMAs first so they are all in flight (deep pipelining
        # replacement for Buffered(n) on the auto-pipelined variant).
        for g in range(G):                      # G is a Python int -> unrolled
            idx = proj_ref[base + g]            # scalar read from SMEM prefetch
            pltpu.make_async_copy(x_hbm.at[idx], buf.at[g], sems.at[g]).start()
        # Drain.
        for g in range(G):
            pltpu.make_async_copy(x_hbm.at[0], buf.at[g], sems.at[g]).wait()
        # One lane-dense store of the whole chunk.
        o_ref[...] = buf[...]

    return kernel


@functools.partial(jax.jit, static_argnames=("group", "min_pallas_bytes"))
def projection_forward(x, proj, *, group=8, min_pallas_bytes=256 << 10):
    """x: [B, N, *rest] array, proj: [P] int32 indices into axis 1 -> [B, P, *rest]."""
    B, N = x.shape[0], x.shape[1]
    rest = x.shape[2:]
    D = int(np.prod(rest)) if rest else 1
    P = int(proj.shape[0])
    itemsize = jnp.dtype(x.dtype).itemsize
    proj = proj.astype(jnp.int32)

    # Fast path: for tiny gathers the pallas_call launch + grid loop costs more
    # than a fused XLA gather.
    if P * B * D * itemsize < min_pallas_bytes:
        return jnp.take(x, proj, axis=1)

    # ---- wrapper-side re-layout: indexed axis leading, lane axis = B*D ---------
    BD = B * D
    BD_pad = BD + (-BD) % 128                      # lane-dense (multiple of 128)
    x2 = jnp.moveaxis(x.reshape(B, N, D), 1, 0).reshape(N, BD)
    if BD_pad != BD:
        x2 = jnp.pad(x2, ((0, 0), (0, BD_pad - BD)))

    # ---- choose chunk size G under a conservative VMEM budget (v7x: 64 MiB) ----
    G = max(1, int(group))
    budget = 24 << 20                              # scratch + 2x output buffers
    while G > 8 and 3 * G * BD_pad * itemsize > budget:
        G //= 2
    if P <= G:
        G = P                                      # single step, block == full dim
        P_pad = P
    else:
        G = max(8, (G // 8) * 8)                   # keep sublane-aligned blocks
        P_pad = -(-P // G) * G

    proj_pad = proj if P_pad == P else jnp.pad(proj, (0, P_pad - P))  # idx 0 is safe

    grid_spec = pltpu.PrefetchScalarGridSpec(
        num_scalar_prefetch=1,                     # proj -> SMEM
        grid=(P_pad // G,),
        in_specs=[pl.BlockSpec(memory_space=pl.ANY)],   # x2 stays in HBM
        out_specs=pl.BlockSpec((G, BD_pad), lambda i, proj_ref: (i, 0)),
        scratch_shapes=[
            pltpu.VMEM((G, BD_pad), x.dtype),      # gather landing buffer
            pltpu.SemaphoreType.DMA((G,)),         # one sem per in-flight row DMA
        ],
    )

    vmem_limit = int(max(32 << 20, 4 * G * BD_pad * itemsize))

    out2 = pl.pallas_call(
        _make_gather_kernel(G),
        out_shape=jax.ShapeDtypeStruct((P_pad, BD_pad), x.dtype),
        grid_spec=grid_spec,
        compiler_params=pltpu.CompilerParams(
            dimension_semantics=("parallel",),     # disjoint output tiles -> 2 TCs on v7x
            vmem_limit_bytes=vmem_limit,
        ),
        cost_estimate=pl.CostEstimate(
            flops=0,
            transcendentals=0,
            bytes_accessed=2 * P * B * D * itemsize,
        ),
    )(proj_pad, x2)

    # ---- undo the layout plumbing ----------------------------------------------
    out = out2[:P, :BD].reshape(P, B, D)
    out = jnp.moveaxis(out, 0, 1)                  # -> [B, P, D]
    return out.reshape((B, P) + rest) if rest else out.reshape(B, P)


if __name__ == "__main__":
    key = jax.random.PRNGKey(0)

    # Small shapes consistent with the module: batch=2, N=16 rows, feature D=128.
    B, N, D = 2, 16, 128
    x = jax.random.normal(key, (B, N, D), dtype=jnp.float32)

    # Deterministic "proj" parameter (module __init__ argument): P=8 indices,
    # including duplicates.
    proj = jnp.array([3, 0, 7, 7, 1, 15, 4, 9], dtype=jnp.int32)

    # min_pallas_bytes=0 forces the Pallas path even at this tiny size so the
    # kernel itself is exercised (the default would take the jnp.take fast path).
    out = projection_forward(x, proj, min_pallas_bytes=0)
    out = jax.block_until_ready(out)

    # Reference: PyTorch x[:, proj] == numpy take along axis 1.
    ref = np.asarray(x)[:, np.asarray(proj)]
    np.testing.assert_allclose(np.asarray(out), ref, rtol=0, atol=0)
    assert out.shape == (B, proj.shape[0], D)

    print("KERNEL_OK")
</pallas_src>

<mosaic_0001>
module attributes {stable_mosaic.version = 11 : i64} {
  func.func @kernel(%arg0: i32, %arg1: memref<8xi32, #tpu.memory_space<smem>>, %arg2: memref<16x256xf32, #tpu.memory_space<any>>, %arg3: memref<8x256xf32, #tpu.memory_space<vmem>>, %arg4: memref<8x256xf32, #tpu.memory_space<vmem>>, %arg5: memref<8x!tpu.dma_semaphore, #tpu.memory_space<semaphore_mem>>) attributes {dimension_semantics = [#tpu.dimension_semantics<parallel>], iteration_bounds = array<i64: 1>, scalar_prefetch = 1 : i64, scratch_operands = 2 : i64, tpu.core_type = #tpu.core_type<tc>, window_params = [{}, {transform_indices = @transform_1, window_bounds = array<i64: 8, 256>}]} {
    %c8_i32 = arith.constant 8 : i32
    %0 = arith.muli %arg0, %c8_i32 : i32
    %c0_i32 = arith.constant 0 : i32
    %1 = arith.addi %0, %c0_i32 : i32
    %2 = arith.index_cast %1 : i32 to index
    %3 = memref.load %arg1[%2] : memref<8xi32, #tpu.memory_space<smem>>
    %c0_i32_0 = arith.constant 0 : i32
    %c0_i32_1 = arith.constant 0 : i32
    %c0_i32_2 = arith.constant 0 : i32
    %4 = tpu.memref_slice %arg2[%3, %c0_i32_2] : memref<16x256xf32, #tpu.memory_space<any>> -> memref<1x256xf32, #tpu.memory_space<any>>
    %5 = tpu.memref_squeeze %4 : memref<1x256xf32, #tpu.memory_space<any>> -> memref<256xf32, #tpu.memory_space<any>>
    %c0_i32_3 = arith.constant 0 : i32
    %6 = tpu.memref_slice %arg4[%c0_i32_0, %c0_i32_3] : memref<8x256xf32, #tpu.memory_space<vmem>> -> memref<1x256xf32, #tpu.memory_space<vmem>>
    %7 = tpu.memref_squeeze %6 : memref<1x256xf32, #tpu.memory_space<vmem>> -> memref<256xf32, #tpu.memory_space<vmem>>
    %8 = tpu.memref_slice %arg5[%c0_i32_1] : memref<8x!tpu.dma_semaphore, #tpu.memory_space<semaphore_mem>> -> memref<1x!tpu.dma_semaphore, #tpu.memory_space<semaphore_mem>>
    %9 = tpu.memref_squeeze %8 : memref<1x!tpu.dma_semaphore, #tpu.memory_space<semaphore_mem>> -> memref<!tpu.dma_semaphore, #tpu.memory_space<semaphore_mem>>
    tpu.enqueue_dma source(%5 : memref<256xf32, #tpu.memory_space<any>>) target(%7 : memref<256xf32, #tpu.memory_space<vmem>>) target_semaphore(%9 : memref<!tpu.dma_semaphore, #tpu.memory_space<semaphore_mem>>)
    %c1_i32 = arith.constant 1 : i32
    %10 = arith.addi %0, %c1_i32 : i32
    %11 = arith.index_cast %10 : i32 to index
    %12 = memref.load %arg1[%11] : memref<8xi32, #tpu.memory_space<smem>>
    %c1_i32_4 = arith.constant 1 : i32
    %c1_i32_5 = arith.constant 1 : i32
    %c0_i32_6 = arith.constant 0 : i32
    %13 = tpu.memref_slice %arg2[%12, %c0_i32_6] : memref<16x256xf32, #tpu.memory_space<any>> -> memref<1x256xf32, #tpu.memory_space<any>>
    %14 = tpu.memref_squeeze %13 : memref<1x256xf32, #tpu.memory_space<any>> -> memref<256xf32, #tpu.memory_space<any>>
    %c0_i32_7 = arith.constant 0 : i32
    %15 = tpu.memref_slice %arg4[%c1_i32_4, %c0_i32_7] : memref<8x256xf32, #tpu.memory_space<vmem>> -> memref<1x256xf32, #tpu.memory_space<vmem>>
    %16 = tpu.memref_squeeze %15 : memref<1x256xf32, #tpu.memory_space<vmem>> -> memref<256xf32, #tpu.memory_space<vmem>>
    %17 = tpu.memref_slice %arg5[%c1_i32_5] : memref<8x!tpu.dma_semaphore, #tpu.memory_space<semaphore_mem>> -> memref<1x!tpu.dma_semaphore, #tpu.memory_space<semaphore_mem>>
    %18 = tpu.memref_squeeze %17 : memref<1x!tpu.dma_semaphore, #tpu.memory_space<semaphore_mem>> -> memref<!tpu.dma_semaphore, #tpu.memory_space<semaphore_mem>>
    tpu.enqueue_dma source(%14 : memref<256xf32, #tpu.memory_space<any>>) target(%16 : memref<256xf32, #tpu.memory_space<vmem>>) target_semaphore(%18 : memref<!tpu.dma_semaphore, #tpu.memory_space<semaphore_mem>>)
    %c2_i32 = arith.constant 2 : i32
    %19 = arith.addi %0, %c2_i32 : i32
    %20 = arith.index_cast %19 : i32 to index
    %21 = memref.load %arg1[%20] : memref<8xi32, #tpu.memory_space<smem>>
    %c2_i32_8 = arith.constant 2 : i32
    %c2_i32_9 = arith.constant 2 : i32
    %c0_i32_10 = arith.constant 0 : i32
    %22 = tpu.memref_slice %arg2[%21, %c0_i32_10] : memref<16x256xf32, #tpu.memory_space<any>> -> memref<1x256xf32, #tpu.memory_space<any>>
    %23 = tpu.memref_squeeze %22 : memref<1x256xf32, #tpu.memory_space<any>> -> memref<256xf32, #tpu.memory_space<any>>
    %c0_i32_11 = arith.constant 0 : i32
    %24 = tpu.memref_slice %arg4[%c2_i32_8, %c0_i32_11] : memref<8x256xf32, #tpu.memory_space<vmem>> -> memref<1x256xf32, #tpu.memory_space<vmem>>
    %25 = tpu.memref_squeeze %24 : memref<1x256xf32, #tpu.memory_space<vmem>> -> memref<256xf32, #tpu.memory_space<vmem>>
    %26 = tpu.memref_slice %arg5[%c2_i32_9] : memref<8x!tpu.dma_semaphore, #tpu.memory_space<semaphore_mem>> -> memref<1x!tpu.dma_semaphore, #tpu.memory_space<semaphore_mem>>
    %27 = tpu.memref_squeeze %26 : memref<1x!tpu.dma_semaphore, #tpu.memory_space<semaphore_mem>> -> memref<!tpu.dma_semaphore, #tpu.memory_space<semaphore_mem>>
    tpu.enqueue_dma source(%23 : memref<256xf32, #tpu.memory_space<any>>) target(%25 : memref<256xf32, #tpu.memory_space<vmem>>) target_semaphore(%27 : memref<!tpu.dma_semaphore, #tpu.memory_space<semaphore_mem>>)
    %c3_i32 = arith.constant 3 : i32
    %28 = arith.addi %0, %c3_i32 : i32
    %29 = arith.index_cast %28 : i32 to index
    %30 = memref.load %arg1[%29] : memref<8xi32, #tpu.memory_space<smem>>
    %c3_i32_12 = arith.constant 3 : i32
    %c3_i32_13 = arith.constant 3 : i32
    %c0_i32_14 = arith.constant 0 : i32
    %31 = tpu.memref_slice %arg2[%30, %c0_i32_14] : memref<16x256xf32, #tpu.memory_space<any>> -> memref<1x256xf32, #tpu.memory_space<any>>
    %32 = tpu.memref_squeeze %31 : memref<1x256xf32, #tpu.memory_space<any>> -> memref<256xf32, #tpu.memory_space<any>>
    %c0_i32_15 = arith.constant 0 : i32
    %33 = tpu.memref_slice %arg4[%c3_i32_12, %c0_i32_15] : memref<8x256xf32, #tpu.memory_space<vmem>> -> memref<1x256xf32, #tpu.memory_space<vmem>>
    %34 = tpu.memref_squeeze %33 : memref<1x256xf32, #tpu.memory_space<vmem>> -> memref<256xf32, #tpu.memory_space<vmem>>
    %35 = tpu.memref_slice %arg5[%c3_i32_13] : memref<8x!tpu.dma_semaphore, #tpu.memory_space<semaphore_mem>> -> memref<1x!tpu.dma_semaphore, #tpu.memory_space<semaphore_mem>>
    %36 = tpu.memref_squeeze %35 : memref<1x!tpu.dma_semaphore, #tpu.memory_space<semaphore_mem>> -> memref<!tpu.dma_semaphore, #tpu.memory_space<semaphore_mem>>
    tpu.enqueue_dma source(%32 : memref<256xf32, #tpu.memory_space<any>>) target(%34 : memref<256xf32, #tpu.memory_space<vmem>>) target_semaphore(%36 : memref<!tpu.dma_semaphore, #tpu.memory_space<semaphore_mem>>)
    %c4_i32 = arith.constant 4 : i32
    %37 = arith.addi %0, %c4_i32 : i32
    %38 = arith.index_cast %37 : i32 to index
    %39 = memref.load %arg1[%38] : memref<8xi32, #tpu.memory_space<smem>>
    %c4_i32_16 = arith.constant 4 : i32
    %c4_i32_17 = arith.constant 4 : i32
    %c0_i32_18 = arith.constant 0 : i32
    %40 = tpu.memref_slice %arg2[%39, %c0_i32_18] : memref<16x256xf32, #tpu.memory_space<any>> -> memref<1x256xf32, #tpu.memory_space<any>>
    %41 = tpu.memref_squeeze %40 : memref<1x256xf32, #tpu.memory_space<any>> -> memref<256xf32, #tpu.memory_space<any>>
    %c0_i32_19 = arith.constant 0 : i32
    %42 = tpu.memref_slice %arg4[%c4_i32_16, %c0_i32_19] : memref<8x256xf32, #tpu.memory_space<vmem>> -> memref<1x256xf32, #tpu.memory_space<vmem>>
    %43 = tpu.memref_squeeze %42 : memref<1x256xf32, #tpu.memory_space<vmem>> -> memref<256xf32, #tpu.memory_space<vmem>>
    %44 = tpu.memref_slice %arg5[%c4_i32_17] : memref<8x!tpu.dma_semaphore, #tpu.memory_space<semaphore_mem>> -> memref<1x!tpu.dma_semaphore, #tpu.memory_space<semaphore_mem>>
    %45 = tpu.memref_squeeze %44 : memref<1x!tpu.dma_semaphore, #tpu.memory_space<semaphore_mem>> -> memref<!tpu.dma_semaphore, #tpu.memory_space<semaphore_mem>>
    tpu.enqueue_dma source(%41 : memref<256xf32, #tpu.memory_space<any>>) target(%43 : memref<256xf32, #tpu.memory_space<vmem>>) target_semaphore(%45 : memref<!tpu.dma_semaphore, #tpu.memory_space<semaphore_mem>>)
    %c5_i32 = arith.constant 5 : i32
    %46 = arith.addi %0, %c5_i32 : i32
    %47 = arith.index_cast %46 : i32 to index
    %48 = memref.load %arg1[%47] : memref<8xi32, #tpu.memory_space<smem>>
    %c5_i32_20 = arith.constant 5 : i32
    %c5_i32_21 = arith.constant 5 : i32
    %c0_i32_22 = arith.constant 0 : i32
    %49 = tpu.memref_slice %arg2[%48, %c0_i32_22] : memref<16x256xf32, #tpu.memory_space<any>> -> memref<1x256xf32, #tpu.memory_space<any>>
    %50 = tpu.memref_squeeze %49 : memref<1x256xf32, #tpu.memory_space<any>> -> memref<256xf32, #tpu.memory_space<any>>
    %c0_i32_23 = arith.constant 0 : i32
    %51 = tpu.memref_slice %arg4[%c5_i32_20, %c0_i32_23] : memref<8x256xf32, #tpu.memory_space<vmem>> -> memref<1x256xf32, #tpu.memory_space<vmem>>
    %52 = tpu.memref_squeeze %51 : memref<1x256xf32, #tpu.memory_space<vmem>> -> memref<256xf32, #tpu.memory_space<vmem>>
    %53 = tpu.memref_slice %arg5[%c5_i32_21] : memref<8x!tpu.dma_semaphore, #tpu.memory_space<semaphore_mem>> -> memref<1x!tpu.dma_semaphore, #tpu.memory_space<semaphore_mem>>
    %54 = tpu.memref_squeeze %53 : memref<1x!tpu.dma_semaphore, #tpu.memory_space<semaphore_mem>> -> memref<!tpu.dma_semaphore, #tpu.memory_space<semaphore_mem>>
    tpu.enqueue_dma source(%50 : memref<256xf32, #tpu.memory_space<any>>) target(%52 : memref<256xf32, #tpu.memory_space<vmem>>) target_semaphore(%54 : memref<!tpu.dma_semaphore, #tpu.memory_space<semaphore_mem>>)
    %c6_i32 = arith.constant 6 : i32
    %55 = arith.addi %0, %c6_i32 : i32
    %56 = arith.index_cast %55 : i32 to index
    %57 = memref.load %arg1[%56] : memref<8xi32, #tpu.memory_space<smem>>
    %c6_i32_24 = arith.constant 6 : i32
    %c6_i32_25 = arith.constant 6 : i32
    %c0_i32_26 = arith.constant 0 : i32
    %58 = tpu.memref_slice %arg2[%57, %c0_i32_26] : memref<16x256xf32, #tpu.memory_space<any>> -> memref<1x256xf32, #tpu.memory_space<any>>
    %59 = tpu.memref_squeeze %58 : memref<1x256xf32, #tpu.memory_space<any>> -> memref<256xf32, #tpu.memory_space<any>>
    %c0_i32_27 = arith.constant 0 : i32
    %60 = tpu.memref_slice %arg4[%c6_i32_24, %c0_i32_27] : memref<8x256xf32, #tpu.memory_space<vmem>> -> memref<1x256xf32, #tpu.memory_space<vmem>>
    %61 = tpu.memref_squeeze %60 : memref<1x256xf32, #tpu.memory_space<vmem>> -> memref<256xf32, #tpu.memory_space<vmem>>
    %62 = tpu.memref_slice %arg5[%c6_i32_25] : memref<8x!tpu.dma_semaphore, #tpu.memory_space<semaphore_mem>> -> memref<1x!tpu.dma_semaphore, #tpu.memory_space<semaphore_mem>>
    %63 = tpu.memref_squeeze %62 : memref<1x!tpu.dma_semaphore, #tpu.memory_space<semaphore_mem>> -> memref<!tpu.dma_semaphore, #tpu.memory_space<semaphore_mem>>
    tpu.enqueue_dma source(%59 : memref<256xf32, #tpu.memory_space<any>>) target(%61 : memref<256xf32, #tpu.memory_space<vmem>>) target_semaphore(%63 : memref<!tpu.dma_semaphore, #tpu.memory_space<semaphore_mem>>)
    %c7_i32 = arith.constant 7 : i32
    %64 = arith.addi %0, %c7_i32 : i32
    %65 = arith.index_cast %64 : i32 to index
    %66 = memref.load %arg1[%65] : memref<8xi32, #tpu.memory_space<smem>>
    %c7_i32_28 = arith.constant 7 : i32
    %c7_i32_29 = arith.constant 7 : i32
    %c0_i32_30 = arith.constant 0 : i32
    %67 = tpu.memref_slice %arg2[%66, %c0_i32_30] : memref<16x256xf32, #tpu.memory_space<any>> -> memref<1x256xf32, #tpu.memory_space<any>>
    %68 = tpu.memref_squeeze %67 : memref<1x256xf32, #tpu.memory_space<any>> -> memref<256xf32, #tpu.memory_space<any>>
    %c0_i32_31 = arith.constant 0 : i32
    %69 = tpu.memref_slice %arg4[%c7_i32_28, %c0_i32_31] : memref<8x256xf32, #tpu.memory_space<vmem>> -> memref<1x256xf32, #tpu.memory_space<vmem>>
    %70 = tpu.memref_squeeze %69 : memref<1x256xf32, #tpu.memory_space<vmem>> -> memref<256xf32, #tpu.memory_space<vmem>>
    %71 = tpu.memref_slice %arg5[%c7_i32_29] : memref<8x!tpu.dma_semaphore, #tpu.memory_space<semaphore_mem>> -> memref<1x!tpu.dma_semaphore, #tpu.memory_space<semaphore_mem>>
    %72 = tpu.memref_squeeze %71 : memref<1x!tpu.dma_semaphore, #tpu.memory_space<semaphore_mem>> -> memref<!tpu.dma_semaphore, #tpu.memory_space<semaphore_mem>>
    tpu.enqueue_dma source(%68 : memref<256xf32, #tpu.memory_space<any>>) target(%70 : memref<256xf32, #tpu.memory_space<vmem>>) target_semaphore(%72 : memref<!tpu.dma_semaphore, #tpu.memory_space<semaphore_mem>>)
    %c0_i32_32 = arith.constant 0 : i32
    %c0_i32_33 = arith.constant 0 : i32
    %c0_i32_34 = arith.constant 0 : i32
    %c0_i32_35 = arith.constant 0 : i32
    %73 = tpu.memref_slice %arg2[%c0_i32_32, %c0_i32_35] : memref<16x256xf32, #tpu.memory_space<any>> -> memref<1x256xf32, #tpu.memory_space<any>>
    %74 = tpu.memref_squeeze %73 : memref<1x256xf32, #tpu.memory_space<any>> -> memref<256xf32, #tpu.memory_space<any>>
    %c0_i32_36 = arith.constant 0 : i32
    %75 = tpu.memref_slice %arg4[%c0_i32_33, %c0_i32_36] : memref<8x256xf32, #tpu.memory_space<vmem>> -> memref<1x256xf32, #tpu.memory_space<vmem>>
    %76 = tpu.memref_squeeze %75 : memref<1x256xf32, #tpu.memory_space<vmem>> -> memref<256xf32, #tpu.memory_space<vmem>>
    %77 = tpu.memref_slice %arg5[%c0_i32_34] : memref<8x!tpu.dma_semaphore, #tpu.memory_space<semaphore_mem>> -> memref<1x!tpu.dma_semaphore, #tpu.memory_space<semaphore_mem>>
    %78 = tpu.memref_squeeze %77 : memref<1x!tpu.dma_semaphore, #tpu.memory_space<semaphore_mem>> -> memref<!tpu.dma_semaphore, #tpu.memory_space<semaphore_mem>>
    tpu.wait_dma2 semaphore(%78 : memref<!tpu.dma_semaphore, #tpu.memory_space<semaphore_mem>>) src(%74 : memref<256xf32, #tpu.memory_space<any>>) dst(%76 : memref<256xf32, #tpu.memory_space<vmem>>)
    %c0_i32_37 = arith.constant 0 : i32
    %c1_i32_38 = arith.constant 1 : i32
    %c1_i32_39 = arith.constant 1 : i32
    %c0_i32_40 = arith.constant 0 : i32
    %79 = tpu.memref_slice %arg2[%c0_i32_37, %c0_i32_40] : memref<16x256xf32, #tpu.memory_space<any>> -> memref<1x256xf32, #tpu.memory_space<any>>
    %80 = tpu.memref_squeeze %79 : memref<1x256xf32, #tpu.memory_space<any>> -> memref<256xf32, #tpu.memory_space<any>>
    %c0_i32_41 = arith.constant 0 : i32
    %81 = tpu.memref_slice %arg4[%c1_i32_38, %c0_i32_41] : memref<8x256xf32, #tpu.memory_space<vmem>> -> memref<1x256xf32, #tpu.memory_space<vmem>>
    %82 = tpu.memref_squeeze %81 : memref<1x256xf32, #tpu.memory_space<vmem>> -> memref<256xf32, #tpu.memory_space<vmem>>
    %83 = tpu.memref_slice %arg5[%c1_i32_39] : memref<8x!tpu.dma_semaphore, #tpu.memory_space<semaphore_mem>> -> memref<1x!tpu.dma_semaphore, #tpu.memory_space<semaphore_mem>>
    %84 = tpu.memref_squeeze %83 : memref<1x!tpu.dma_semaphore, #tpu.memory_space<semaphore_mem>> -> memref<!tpu.dma_semaphore, #tpu.memory_space<semaphore_mem>>
    tpu.wait_dma2 semaphore(%84 : memref<!tpu.dma_semaphore, #tpu.memory_space<semaphore_mem>>) src(%80 : memref<256xf32, #tpu.memory_space<any>>) dst(%82 : memref<256xf32, #tpu.memory_space<vmem>>)
    %c0_i32_42 = arith.constant 0 : i32
    %c2_i32_43 = arith.constant 2 : i32
    %c2_i32_44 = arith.constant 2 : i32
    %c0_i32_45 = arith.constant 0 : i32
    %85 = tpu.memref_slice %arg2[%c0_i32_42, %c0_i32_45] : memref<16x256xf32, #tpu.memory_space<any>> -> memref<1x256xf32, #tpu.memory_space<any>>
    %86 = tpu.memref_squeeze %85 : memref<1x256xf32, #tpu.memory_space<any>> -> memref<256xf32, #tpu.memory_space<any>>
    %c0_i32_46 = arith.constant 0 : i32
    %87 = tpu.memref_slice %arg4[%c2_i32_43, %c0_i32_46] : memref<8x256xf32, #tpu.memory_space<vmem>> -> memref<1x256xf32, #tpu.memory_space<vmem>>
    %88 = tpu.memref_squeeze %87 : memref<1x256xf32, #tpu.memory_space<vmem>> -> memref<256xf32, #tpu.memory_space<vmem>>
    %89 = tpu.memref_slice %arg5[%c2_i32_44] : memref<8x!tpu.dma_semaphore, #tpu.memory_space<semaphore_mem>> -> memref<1x!tpu.dma_semaphore, #tpu.memory_space<semaphore_mem>>
    %90 = tpu.memref_squeeze %89 : memref<1x!tpu.dma_semaphore, #tpu.memory_space<semaphore_mem>> -> memref<!tpu.dma_semaphore, #tpu.memory_space<semaphore_mem>>
    tpu.wait_dma2 semaphore(%90 : memref<!tpu.dma_semaphore, #tpu.memory_space<semaphore_mem>>) src(%86 : memref<256xf32, #tpu.memory_space<any>>) dst(%88 : memref<256xf32, #tpu.memory_space<vmem>>)
    %c0_i32_47 = arith.constant 0 : i32
    %c3_i32_48 = arith.constant 3 : i32
    %c3_i32_49 = arith.constant 3 : i32
    %c0_i32_50 = arith.constant 0 : i32
    %91 = tpu.memref_slice %arg2[%c0_i32_47, %c0_i32_50] : memref<16x256xf32, #tpu.memory_space<any>> -> memref<1x256xf32, #tpu.memory_space<any>>
    %92 = tpu.memref_squeeze %91 : memref<1x256xf32, #tpu.memory_space<any>> -> memref<256xf32, #tpu.memory_space<any>>
    %c0_i32_51 = arith.constant 0 : i32
    %93 = tpu.memref_slice %arg4[%c3_i32_48, %c0_i32_51] : memref<8x256xf32, #tpu.memory_space<vmem>> -> memref<1x256xf32, #tpu.memory_space<vmem>>
    %94 = tpu.memref_squeeze %93 : memref<1x256xf32, #tpu.memory_space<vmem>> -> memref<256xf32, #tpu.memory_space<vmem>>
    %95 = tpu.memref_slice %arg5[%c3_i32_49] : memref<8x!tpu.dma_semaphore, #tpu.memory_space<semaphore_mem>> -> memref<1x!tpu.dma_semaphore, #tpu.memory_space<semaphore_mem>>
    %96 = tpu.memref_squeeze %95 : memref<1x!tpu.dma_semaphore, #tpu.memory_space<semaphore_mem>> -> memref<!tpu.dma_semaphore, #tpu.memory_space<semaphore_mem>>
    tpu.wait_dma2 semaphore(%96 : memref<!tpu.dma_semaphore, #tpu.memory_space<semaphore_mem>>) src(%92 : memref<256xf32, #tpu.memory_space<any>>) dst(%94 : memref<256xf32, #tpu.memory_space<vmem>>)
    %c0_i32_52 = arith.constant 0 : i32
    %c4_i32_53 = arith.constant 4 : i32
    %c4_i32_54 = arith.constant 4 : i32
    %c0_i32_55 = arith.constant 0 : i32
    %97 = tpu.memref_slice %arg2[%c0_i32_52, %c0_i32_55] : memref<16x256xf32, #tpu.memory_space<any>> -> memref<1x256xf32, #tpu.memory_space<any>>
    %98 = tpu.memref_squeeze %97 : memref<1x256xf32, #tpu.memory_space<any>> -> memref<256xf32, #tpu.memory_space<any>>
    %c0_i32_56 = arith.constant 0 : i32
    %99 = tpu.memref_slice %arg4[%c4_i32_53, %c0_i32_56] : memref<8x256xf32, #tpu.memory_space<vmem>> -> memref<1x256xf32, #tpu.memory_space<vmem>>
    %100 = tpu.memref_squeeze %99 : memref<1x256xf32, #tpu.memory_space<vmem>> -> memref<256xf32, #tpu.memory_space<vmem>>
    %101 = tpu.memref_slice %arg5[%c4_i32_54] : memref<8x!tpu.dma_semaphore, #tpu.memory_space<semaphore_mem>> -> memref<1x!tpu.dma_semaphore, #tpu.memory_space<semaphore_mem>>
    %102 = tpu.memref_squeeze %101 : memref<1x!tpu.dma_semaphore, #tpu.memory_space<semaphore_mem>> -> memref<!tpu.dma_semaphore, #tpu.memory_space<semaphore_mem>>
    tpu.wait_dma2 semaphore(%102 : memref<!tpu.dma_semaphore, #tpu.memory_space<semaphore_mem>>) src(%98 : memref<256xf32, #tpu.memory_space<any>>) dst(%100 : memref<256xf32, #tpu.memory_space<vmem>>)
    %c0_i32_57 = arith.constant 0 : i32
    %c5_i32_58 = arith.constant 5 : i32
    %c5_i32_59 = arith.constant 5 : i32
    %c0_i32_60 = arith.constant 0 : i32
    %103 = tpu.memref_slice %arg2[%c0_i32_57, %c0_i32_60] : memref<16x256xf32, #tpu.memory_space<any>> -> memref<1x256xf32, #tpu.memory_space<any>>
    %104 = tpu.memref_squeeze %103 : memref<1x256xf32, #tpu.memory_space<any>> -> memref<256xf32, #tpu.memory_space<any>>
    %c0_i32_61 = arith.constant 0 : i32
    %105 = tpu.memref_slice %arg4[%c5_i32_58, %c0_i32_61] : memref<8x256xf32, #tpu.memory_space<vmem>> -> memref<1x256xf32, #tpu.memory_space<vmem>>
    %106 = tpu.memref_squeeze %105 : memref<1x256xf32, #tpu.memory_space<vmem>> -> memref<256xf32, #tpu.memory_space<vmem>>
    %107 = tpu.memref_slice %arg5[%c5_i32_59] : memref<8x!tpu.dma_semaphore, #tpu.memory_space<semaphore_mem>> -> memref<1x!tpu.dma_semaphore, #tpu.memory_space<semaphore_mem>>
    %108 = tpu.memref_squeeze %107 : memref<1x!tpu.dma_semaphore, #tpu.memory_space<semaphore_mem>> -> memref<!tpu.dma_semaphore, #tpu.memory_space<semaphore_mem>>
    tpu.wait_dma2 semaphore(%108 : memref<!tpu.dma_semaphore, #tpu.memory_space<semaphore_mem>>) src(%104 : memref<256xf32, #tpu.memory_space<any>>) dst(%106 : memref<256xf32, #tpu.memory_space<vmem>>)
    %c0_i32_62 = arith.constant 0 : i32
    %c6_i32_63 = arith.constant 6 : i32
    %c6_i32_64 = arith.constant 6 : i32
    %c0_i32_65 = arith.constant 0 : i32
    %109 = tpu.memref_slice %arg2[%c0_i32_62, %c0_i32_65] : memref<16x256xf32, #tpu.memory_space<any>> -> memref<1x256xf32, #tpu.memory_space<any>>
    %110 = tpu.memref_squeeze %109 : memref<1x256xf32, #tpu.memory_space<any>> -> memref<256xf32, #tpu.memory_space<any>>
    %c0_i32_66 = arith.constant 0 : i32
    %111 = tpu.memref_slice %arg4[%c6_i32_63, %c0_i32_66] : memref<8x256xf32, #tpu.memory_space<vmem>> -> memref<1x256xf32, #tpu.memory_space<vmem>>
    %112 = tpu.memref_squeeze %111 : memref<1x256xf32, #tpu.memory_space<vmem>> -> memref<256xf32, #tpu.memory_space<vmem>>
    %113 = tpu.memref_slice %arg5[%c6_i32_64] : memref<8x!tpu.dma_semaphore, #tpu.memory_space<semaphore_mem>> -> memref<1x!tpu.dma_semaphore, #tpu.memory_space<semaphore_mem>>
    %114 = tpu.memref_squeeze %113 : memref<1x!tpu.dma_semaphore, #tpu.memory_space<semaphore_mem>> -> memref<!tpu.dma_semaphore, #tpu.memory_space<semaphore_mem>>
    tpu.wait_dma2 semaphore(%114 : memref<!tpu.dma_semaphore, #tpu.memory_space<semaphore_mem>>) src(%110 : memref<256xf32, #tpu.memory_space<any>>) dst(%112 : memref<256xf32, #tpu.memory_space<vmem>>)
    %c0_i32_67 = arith.constant 0 : i32
    %c7_i32_68 = arith.constant 7 : i32
    %c7_i32_69 = arith.constant 7 : i32
    %c0_i32_70 = arith.constant 0 : i32
    %115 = tpu.memref_slice %arg2[%c0_i32_67, %c0_i32_70] : memref<16x256xf32, #tpu.memory_space<any>> -> memref<1x256xf32, #tpu.memory_space<any>>
    %116 = tpu.memref_squeeze %115 : memref<1x256xf32, #tpu.memory_space<any>> -> memref<256xf32, #tpu.memory_space<any>>
    %c0_i32_71 = arith.constant 0 : i32
    %117 = tpu.memref_slice %arg4[%c7_i32_68, %c0_i32_71] : memref<8x256xf32, #tpu.memory_space<vmem>> -> memref<1x256xf32, #tpu.memory_space<vmem>>
    %118 = tpu.memref_squeeze %117 : memref<1x256xf32, #tpu.memory_space<vmem>> -> memref<256xf32, #tpu.memory_space<vmem>>
    %119 = tpu.memref_slice %arg5[%c7_i32_69] : memref<8x!tpu.dma_semaphore, #tpu.memory_space<semaphore_mem>> -> memref<1x!tpu.dma_semaphore, #tpu.memory_space<semaphore_mem>>
    %120 = tpu.memref_squeeze %119 : memref<1x!tpu.dma_semaphore, #tpu.memory_space<semaphore_mem>> -> memref<!tpu.dma_semaphore, #tpu.memory_space<semaphore_mem>>
    tpu.wait_dma2 semaphore(%120 : memref<!tpu.dma_semaphore, #tpu.memory_space<semaphore_mem>>) src(%116 : memref<256xf32, #tpu.memory_space<any>>) dst(%118 : memref<256xf32, #tpu.memory_space<vmem>>)
    %c0 = arith.constant 0 : index
    %c0_72 = arith.constant 0 : index
    %121 = vector.load %arg4[%c0, %c0_72] : memref<8x256xf32, #tpu.memory_space<vmem>>, vector<8x256xf32>
    %c0_73 = arith.constant 0 : index
    %c0_74 = arith.constant 0 : index
    %122 = vector.load %arg3[%c0_73, %c0_74] : memref<8x256xf32, #tpu.memory_space<vmem>>, vector<8x256xf32>
    tpu.vector_store %arg3[%c0_73, %c0_74], %121 {strides = array<i32>} : memref<8x256xf32, #tpu.memory_space<vmem>>, vector<8x256xf32>,
    return
  }
  func.func @transform_1(%arg0: i32, %arg1: memref<8xi32, #tpu.memory_space<smem>>) -> (i32, i32) {
    %c0_i32 = arith.constant 0 : i32
    %c0_i32_0 = arith.constant 0 : i32
    return %arg0, %c0_i32 : i32, i32
  }
}

</mosaic_0001>

<bundles_post_ra>
// kernel: projection_forward.1
= control target key start
LH: loop header
LB: loop body
LE: loop exit
PB: predicated region body
PF: predicated region fallthrough
CT: control target
= control target key end

     0   :  { %s803_s0 = inlined_call_operand.vmem [shape: s32[8], index: 0, kind: input, shape index: {}]   ;;  %s804_s1 = inlined_call_operand.vmem [shape: f32[16,256], index: 1, kind: input, shape index: {}]   ;;  %s805_s2 = inlined_call_operand.hbm [shape: f32[8,256], index: 2, kind: output, shape index: {}]  }
   0x1   :  { %s7_s11 = sshll.u32 %s803_s0, 4  ;;  %s8_s11 = int_to_ptr.vmem [resolvable:$true] %s7_s11 }
   0x2   :  { %s693_s12 = scalar_lea.vmem %s8_s11, 16  ;;  %p698_p1 = scmp.lt.s32.totalorder %s8_s11, %s8_s11 }
   0x3   :  { %p694_p0 = scmp.ne.s32.totalorder %s8_s11, %s693_s12  ;;  %p699_p2 = scmp.lt.s32.totalorder %s693_s12, %s693_s12 }
   0x5   :  { %p700_p3 = por %p699_p2, %p698_p1 }
   0x7   :  { %p701_p4 = pnand %p700_p3, %p694_p0 }
   0x9   :  { %704 = shalt.err (!%p701_p4)  }
   0xa   :  { %s747_s13 = smov [#allocation5]  }
   0xb   :  { %10 = dma.vmem_to_smem %s8_s11, 16, %s747_s13, [#allocation4] }
   0xc   :  { %727 = dma.done.wait [#allocation4], 16 }
   0xd   :  { %728 = vsyncadd [#allocation4], 4294967280 }
   0xe   :  { %12 = sfence }
   0xf   :  { %13 = vsyncpa [#allocation7], 0  ;;  %s15_s14 = sld [smem:[#allocation5]] }
  0x15   :  { %s16_s15 = sshrl.u32 %s15_s14, 3  ;;  %s17_s16 = sand.u32 7, %s15_s14  }
  0x16   :  { %s668_s17 = sshll.u32 %s16_s15, 4 }
  0x17   :  { %s19_s18 = sadd.s32 %s668_s17, %s17_s16 }
  0x18   :  { %s20_s20 = scalar_lea.vmem %s804_s1, %s19_s18 }
  0x19   :  { %v38_v0 = vld [vmem:[%s20_s20] sm:$0x1]  ;;  %v40_v1 = vld [vmem:[%s20_s20 + $0x8] sm:$0x1] }
  0x1a   :  { %39 = vst [vmem:[#allocation2] sm:$0x1] %v38_v0  ;;  %41 = vst [vmem:[#allocation2 + $0x8] sm:$0x1] %v40_v1 }
  0x1b   :  { %68 = vsyncadd [#allocation3], 32  ;;  %s669_s21 = sld [smem:[#allocation5 + $0x1]] }
  0x21   :  { %s71_s22 = sshrl.u32 %s669_s21, 3  ;;  %s72_s23 = sand.u32 7, %s669_s21  }
  0x22   :  { %s670_s24 = sshll.u32 %s71_s22, 4 }
  0x23   :  { %s74_s25 = sadd.s32 %s670_s24, %s72_s23 }
  0x24   :  { %s75_s28 = scalar_lea.vmem %s804_s1, %s74_s25 }
  0x25   :  { %v95_v2 = vld [vmem:[%s75_s28] sm:$0x1]  ;;  %v97_v3 = vld [vmem:[%s75_s28 + $0x8] sm:$0x1] }
  0x26   :  { %96 = vst [vmem:[#allocation2 + $0x1] sm:$0x1] %v95_v2  ;;  %98 = vst [vmem:[#allocation2 + $0x9] sm:$0x1] %v97_v3 }
  0x27   :  { %125 = vsyncadd [#allocation3 + $0x1], 32  ;;  %s671_s29 = sld [smem:[#allocation5 + $0x2]] }
  0x2d   :  { %s128_s30 = sshrl.u32 %s671_s29, 3  ;;  %s129_s3 = sand.u32 7, %s671_s29  }
  0x2e   :  { %s672_s4 = sshll.u32 %s128_s30, 4 }
  0x2f   :  { %s131_s5 = sadd.s32 %s672_s4, %s129_s3 }
  0x30   :  { %s132_s8 = scalar_lea.vmem %s804_s1, %s131_s5 }
  0x31   :  { %v152_v4 = vld [vmem:[%s132_s8] sm:$0x1]  ;;  %v154_v5 = vld [vmem:[%s132_s8 + $0x8] sm:$0x1] }
  0x32   :  { %153 = vst [vmem:[#allocation2 + $0x2] sm:$0x1] %v152_v4  ;;  %155 = vst [vmem:[#allocation2 + $0xa] sm:$0x1] %v154_v5 }
  0x33   :  { %182 = vsyncadd [#allocation3 + $0x2], 32  ;;  %s673_s9 = sld [smem:[#allocation5 + $0x3]] }
  0x39   :  { %s185_s10 = sshrl.u32 %s673_s9, 3  ;;  %s186_s11 = sand.u32 7, %s673_s9  }
  0x3a   :  { %s674_s12 = sshll.u32 %s185_s10, 4 }
  0x3b   :  { %s188_s13 = sadd.s32 %s674_s12, %s186_s11 }
  0x3c   :  { %s189_s16 = scalar_lea.vmem %s804_s1, %s188_s13 }
  0x3d   :  { %v209_v6 = vld [vmem:[%s189_s16] sm:$0x1]  ;;  %v211_v7 = vld [vmem:[%s189_s16 + $0x8] sm:$0x1] }
  0x3e   :  { %210 = vst [vmem:[#allocation2 + $0x3] sm:$0x1] %v209_v6  ;;  %212 = vst [vmem:[#allocation2 + $0xb] sm:$0x1] %v211_v7 }
  0x3f   :  { %239 = vsyncadd [#allocation3 + $0x3], 32  ;;  %s675_s17 = sld [smem:[#allocation5 + $0x4]] }
  0x45   :  { %s242_s18 = sshrl.u32 %s675_s17, 3  ;;  %s243_s0 = sand.u32 7, %s675_s17  }
  0x46   :  { %s676_s19 = sshll.u32 %s242_s18, 4 }
  0x47   :  { %s245_s20 = sadd.s32 %s676_s19, %s243_s0 }
  0x48   :  { %s246_s23 = scalar_lea.vmem %s804_s1, %s245_s20 }
  0x49   :  { %v266_v8 = vld [vmem:[%s246_s23] sm:$0x1]  ;;  %v268_v9 = vld [vmem:[%s246_s23 + $0x8] sm:$0x1] }
  0x4a   :  { %267 = vst [vmem:[#allocation2 + $0x4] sm:$0x1] %v266_v8  ;;  %269 = vst [vmem:[#allocation2 + $0xc] sm:$0x1] %v268_v9 }
  0x4b   :  { %296 = vsyncadd [#allocation3 + $0x4], 32  ;;  %s677_s24 = sld [smem:[#allocation5 + $0x5]] }
  0x51   :  { %s299_s25 = sshrl.u32 %s677_s24, 3  ;;  %s300_s26 = sand.u32 7, %s677_s24  }
  0x52   :  { %s678_s27 = sshll.u32 %s299_s25, 4 }
  0x53   :  { %s302_s28 = sadd.s32 %s678_s27, %s300_s26 }
  0x54   :  { %s303_s3 = scalar_lea.vmem %s804_s1, %s302_s28 }
  0x55   :  { %v323_v10 = vld [vmem:[%s303_s3] sm:$0x1]  ;;  %v325_v11 = vld [vmem:[%s303_s3 + $0x8] sm:$0x1] }
  0x56   :  { %324 = vst [vmem:[#allocation2 + $0x5] sm:$0x1] %v323_v10  ;;  %326 = vst [vmem:[#allocation2 + $0xd] sm:$0x1] %v325_v11 }
  0x57   :  { %353 = vsyncadd [#allocation3 + $0x5], 32  ;;  %s679_s4 = sld [smem:[#allocation5 + $0x6]] }
  0x5d   :  { %s356_s5 = sshrl.u32 %s679_s4, 3  ;;  %s357_s6 = sand.u32 7, %s679_s4  }
  0x5e   :  { %s680_s7 = sshll.u32 %s356_s5, 4 }
  0x5f   :  { %s359_s8 = sadd.s32 %s680_s7, %s357_s6 }
  0x60   :  { %s360_s11 = scalar_lea.vmem %s804_s1, %s359_s8 }
  0x61   :  { %v380_v12 = vld [vmem:[%s360_s11] sm:$0x1]  ;;  %v382_v13 = vld [vmem:[%s360_s11 + $0x8] sm:$0x1] }
  0x62   :  { %381 = vst [vmem:[#allocation2 + $0x6] sm:$0x1] %v380_v12  ;;  %383 = vst [vmem:[#allocation2 + $0xe] sm:$0x1] %v382_v13 }
  0x63   :  { %410 = vsyncadd [#allocation3 + $0x6], 32  ;;  %s681_s12 = sld [smem:[#allocation5 + $0x7]] }
  0x69   :  { %s413_s13 = sshrl.u32 %s681_s12, 3  ;;  %s414_s14 = sand.u32 7, %s681_s12  }
  0x6a   :  { %s682_s15 = sshll.u32 %s413_s13, 4 }
  0x6b   :  { %s416_s16 = sadd.s32 %s682_s15, %s414_s14 }
  0x6c   :  { %s417_s0 = scalar_lea.vmem %s804_s1, %s416_s16 }
  0x6d   :  { %v437_v14 = vld [vmem:[%s417_s0] sm:$0x1]  ;;  %v439_v15 = vld [vmem:[%s417_s0 + $0x8] sm:$0x1] }
  0x6e   :  { %438 = vst [vmem:[#allocation2 + $0x7] sm:$0x1] %v437_v14  ;;  %440 = vst [vmem:[#allocation2 + $0xf] sm:$0x1] %v439_v15 }
  0x6f   :  { %467 = vsyncadd [#allocation3 + $0x7], 32 }
  0x70   :  { %729 = dma.done.wait [#allocation3], 32 }
  0x71   :  { %730 = vsyncadd [#allocation3], 4294967264 }
  0x72   :  { %731 = dma.done.wait [#allocation3 + $0x1], 32 }
  0x73   :  { %732 = vsyncadd [#allocation3 + $0x1], 4294967264 }
  0x74   :  { %733 = dma.done.wait [#allocation3 + $0x2], 32 }
  0x75   :  { %734 = vsyncadd [#allocation3 + $0x2], 4294967264 }
  0x76   :  { %735 = dma.done.wait [#allocation3 + $0x3], 32 }
  0x77   :  { %736 = vsyncadd [#allocation3 + $0x3], 4294967264 }
  0x78   :  { %737 = dma.done.wait [#allocation3 + $0x4], 32 }
  0x79   :  { %738 = vsyncadd [#allocation3 + $0x4], 4294967264 }
  0x7a   :  { %739 = dma.done.wait [#allocation3 + $0x5], 32 }
  0x7b   :  { %740 = vsyncadd [#allocation3 + $0x5], 4294967264 }
  0x7c   :  { %741 = dma.done.wait [#allocation3 + $0x6], 32 }
  0x7d   :  { %742 = vsyncadd [#allocation3 + $0x6], 4294967264 }
  0x7e   :  { %743 = dma.done.wait [#allocation3 + $0x7], 32 }
  0x7f   :  { %744 = vsyncadd [#allocation3 + $0x7], 4294967264  ;;  %s748_s1 = smov [#allocation6]   ;;  %v484_v16 = vld [vmem:[#allocation2] sm:$0xff]  ;;  %v485_v17 = vld [vmem:[#allocation2 + $0x8] sm:$0xff] }
  0x80   :  { %s494_s19 = sshll.u32 %s748_s1, 4  ;;  %486 = vst [vmem:[#allocation6] sm:$0xff] %v484_v16  ;;  %487 = vst [vmem:[#allocation6 + $0x8] sm:$0xff] %v485_v17  ;;  %s495_s19 = int_to_ptr.vmem [resolvable:$true] %s494_s19 }
  0x81   :  { %s705_s20 = scalar_lea.vmem %s495_s19, 256  ;;  %p710_p6 = scmp.lt.s32.totalorder %s495_s19, %s495_s19 }
  0x82   :  { %p706_p5 = scmp.ne.s32.totalorder %s495_s19, %s705_s20  ;;  %p711_p7 = scmp.lt.s32.totalorder %s705_s20, %s705_s20 }
  0x84   :  { %p712_p8 = por %p711_p7, %p710_p6 }
  0x86   :  { %p713_p9 = pnand %p712_p8, %p706_p5 }
  0x88   :  { %716 = shalt.err (!%p713_p9)
}
  0x89   :  { %s717_s23 = scalar_lea.hbm %s805_s2, 256 }
  0x8a   :  { %p718_p10 = scmp.ne.s32.totalorder %s805_s2, %s717_s23  ;;  %p721_p11 = scmp.lt.u32.totalorder %s717_s23, %s805_s2 }
  0x8c   :  { %p723_p12 = pnand %p721_p11, %p718_p10 }
  0x8e   :  { %726 = shalt.err (!%p723_p12)
}
  0x8f   :  { %497 = dma.vmem_to_hbm [thread:$0]  %s495_s19, 256, %s805_s2, [#allocation7]  }
  0x90   :  { %745 = dma.done.wait [#allocation7], 256  }
  0x91   :  { %746 = vsyncadd [#allocation7], 4294967040 }
  0x92   :  { %501 = vsyncpa [#allocation7], 1 }
  0x93   :  { %502 = vsyncmov [#allocation3] }
  0x96   :  { %s503_s30 = vpop.sfrf %502 }
  0x97   :  { %p683_p13 = scmp.ne.s32.totalorder %s503_s30, 0 }
  0x99   :  { %507 = shalt.err (%p683_p13)  }
  0x9a   :  { %509 = vsyncmov [#allocation3 + $0x1] }
  0x9d   :  { %s510_s3 = vpop.sfrf %509 }
  0x9e   :  { %p684_p0 = scmp.ne.s32.totalorder %s510_s3, 0 }
  0xa0   :  { %514 = shalt.err (%p684_p0)  }
  0xa1   :  { %516 = vsyncmov [#allocation3 + $0x2] }
  0xa4   :  { %s517_s4 = vpop.sfrf %516 }
  0xa5   :  { %p685_p1 = scmp.ne.s32.totalorder %s517_s4, 0 }
  0xa7   :  { %521 = shalt.err (%p685_p1)  }
  0xa8   :  { %523 = vsyncmov [#allocation3 + $0x3] }
  0xab   :  { %s524_s5 = vpop.sfrf %523 }
  0xac   :  { %p686_p2 = scmp.ne.s32.totalorder %s524_s5, 0 }
  0xae   :  { %528 = shalt.err (%p686_p2)  }
  0xaf   :  { %530 = vsyncmov [#allocation3 + $0x4] }
  0xb2   :  { %s531_s2 = vpop.sfrf %530 }
  0xb3   :  { %p687_p3 = scmp.ne.s32.totalorder %s531_s2, 0 }
  0xb5   :  { %535 = shalt.err (%p687_p3)  }
  0xb6   :  { %537 = vsyncmov [#allocation3 + $0x5] }
  0xb9   :  { %s538_s6 = vpop.sfrf %537 }
  0xba   :  { %p688_p4 = scmp.ne.s32.totalorder %s538_s6, 0 }
  0xbc   :  { %542 = shalt.err (%p688_p4)  }
  0xbd   :  { %544 = vsyncmov [#allocation3 + $0x6] }
  0xc0   :  { %s545_s7 = vpop.sfrf %544 }
  0xc1   :  { %p689_p5 = scmp.ne.s32.totalorder %s545_s7, 0 }
  0xc3   :  { %549 = shalt.err (%p689_p5)  }
  0xc4   :  { %551 = vsyncmov [#allocation3 + $0x7] }
  0xc7   :  { %s552_s8 = vpop.sfrf %551 }
  0xc8   :  { %p690_p6 = scmp.ne.s32.totalorder %s552_s8, 0 }
  0xca   :  { %556 = shalt.err (%p690_p6)  }

</bundles_post_ra>
